<compile_context>
chip_gen: v7x
topology: tpu7x:2x2x1
jax: 0.10.0
libtpu: 0.0.40
codegen_flags: <defaults>
</compile_context>

<pallas_src>
import functools

import numpy as np
import jax
import jax.numpy as jnp
from jax import lax
from jax.experimental import pallas as pl
from jax.experimental.pallas import tpu as pltpu

KSIZE = 3
SIGMA = 1.25


def gaussian_taps_1d(size: int = 3, sigma: float = 1.0):
    """1-D Gaussian factor of the (separable) torch kernel, as Python floats."""
    # torch: axis = arange(-size//2 + 1.0, size//2 + 1.0)  (floor division)
    axis = np.arange((-size // 2) + 1.0, (size // 2) + 1.0, dtype=np.float32)
    g = np.exp(-(axis ** 2) / (2.0 * sigma ** 2)).astype(np.float32)
    g = g / g.sum()
    return tuple(float(v) for v in g)


def gaussian_kernel_2d(size: int = 3, sigma: float = 1.0) -> jnp.ndarray:
    """2-D Gaussian kernel exactly as the torch module builds it (reference only)."""
    axis = jnp.arange((-size // 2) + 1.0, (size // 2) + 1.0, dtype=jnp.float32)
    x, y = jnp.meshgrid(axis, axis, indexing="ij")
    k = jnp.exp(-(x ** 2 + y ** 2) / (2.0 * sigma ** 2))
    return k / jnp.sum(k)


def _smooth_kernel(x_ref, o_ref, *, taps, H, W):
    # x_ref / o_ref: VMEM blocks of shape (Rb, H*W); each row is one channel
    # plane flattened row-major.  Everything below lives in vregs; no scratch.
    HW = H * W
    pad = len(taps) // 2

    x = x_ref[...].astype(jnp.float32)  # single load + cast of the block

    # Flattened position within each plane (lane axis) and its column index.
    col = lax.broadcasted_iota(jnp.int32, x.shape, dimension=1)
    j = col % W  # column inside an image row

    # --- Horizontal 3-tap pass: neighbour at flat offset o is a lane rotate;
    #     zero it where the true conv2d zero padding applies (j+o outside [0,W)).
    #     pltpu.roll(x, s)[k] == x[(k - s) % HW], so offset o -> shift (-o) % HW.
    t = None
    for d, w in enumerate(taps):
        o = d - pad
        if o == 0:
            term = w * x
        else:
            shifted = pltpu.roll(x, (-o) % HW, axis=1)          # x[k + o]
            valid = (j + o >= 0) & (j + o < W)
            term = w * jnp.where(valid, shifted, 0.0)
        t = term if t is None else t + term

    # --- Vertical 3-tap pass: a row step is a +-W lane rotate in this layout;
    #     the intermediate `t` stays in registers (no scratch store/reload).
    acc = None
    for d, w in enumerate(taps):
        o = d - pad
        if o == 0:
            term = w * t
        else:
            shifted = pltpu.roll(t, (-o * W) % HW, axis=1)       # t[k + o*W]
            valid = (col + o * W >= 0) & (col + o * W < HW)
            term = w * jnp.where(valid, shifted, 0.0)
        acc = term if acc is None else acc + term

    o_ref[...] = acc.astype(o_ref.dtype)


def _pick_row_block(rows: int, cols: int, itemsize: int,
                    max_block_bytes: int = 1 << 20) -> int:
    """Row-block size: multiple of 8, divides `rows`, <= ~1 MB per block,
    and prefers >= 2 grid steps (feeds both v7x TensorCores)."""
    candidates = [rb for rb in range(8, rows + 1, 8)
                  if rows % rb == 0 and rb * cols * itemsize <= max_block_bytes]
    if not candidates:
        # Tiny toy shapes (rows < 8) or huge planes: one full-array block.
        # For very large H*W one would additionally tile H with a 1-px halo to
        # respect v7x's 32 MiB scoped-VMEM default; not needed at these sizes.
        return rows
    multi = [rb for rb in candidates if rows // rb >= 2]
    return max(multi) if multi else max(candidates)


def smoothing(image: jnp.ndarray, *, size: int = KSIZE, sigma: float = SIGMA) -> jnp.ndarray:
    """Depthwise Gaussian smoothing of an NCHW image (same H, W as input)."""
    if size % 2 == 0:
        raise NotImplementedError("only odd kernel sizes are supported")
    N, C, H, W = image.shape
    taps = gaussian_taps_1d(size, sigma)  # compile-time constants, shared by all channels

    # Lane-dense view: each channel plane becomes one row of length H*W.
    # Pure row-major reshape -> no extra HBM pass in the wrapper.
    rows, cols = N * C, H * W
    x2d = image.reshape(rows, cols)

    rb = _pick_row_block(rows, cols, image.dtype.itemsize)
    grid = (rows // rb,)

    kernel_fn = functools.partial(_smooth_kernel, taps=taps, H=H, W=W)

    out2d = pl.pallas_call(
        kernel_fn,
        out_shape=jax.ShapeDtypeStruct((rows, cols), image.dtype),
        grid_spec=pl.GridSpec(
            grid=grid,
            in_specs=[pl.BlockSpec((rb, cols), lambda r: (r, 0))],
            out_specs=pl.BlockSpec((rb, cols), lambda r: (r, 0)),
        ),
        compiler_params=pltpu.CompilerParams(
            dimension_semantics=("parallel",),
        ),
    )(x2d)

    return out2d.reshape(N, C, H, W)


def smoothing_reference(image: jnp.ndarray, weights2d: jnp.ndarray) -> jnp.ndarray:
    """Pure-JAX reference: depthwise (grouped) conv2d, padding=k//2."""
    C = image.shape[1]
    k = weights2d.shape[-1]
    w = jnp.broadcast_to(weights2d, (C, 1, k, k)).astype(jnp.float32)
    return jax.lax.conv_general_dilated(
        image, w,
        window_strides=(1, 1),
        padding=[(k // 2, k // 2), (k // 2, k // 2)],
        dimension_numbers=("NCHW", "OIHW", "NCHW"),
        feature_group_count=C,
        precision=jax.lax.Precision.HIGHEST,
    )


if __name__ == "__main__":
    # Module hard-codes 3 channels (kernel.repeat(3,1,1,1), groups=3).
    N, C, H, W = 2, 3, 16, 16

    key = jax.random.PRNGKey(0)
    image = jax.random.normal(key, (N, C, H, W), dtype=jnp.float32)

    out = smoothing(image)
    out = jax.block_until_ready(out)

    ref = smoothing_reference(image, gaussian_kernel_2d(KSIZE, SIGMA))
    assert out.shape == (N, C, H, W)
    assert jnp.allclose(out, ref, atol=1e-5, rtol=1e-5), "mismatch vs reference conv"

    print("KERNEL_OK")
</pallas_src>

<mosaic_0001>
module attributes {stable_mosaic.version = 11 : i64} {
  func.func @_smooth_kernel(%arg0: i32, %arg1: memref<6x256xf32, #tpu.memory_space<vmem>>, %arg2: memref<6x256xf32, #tpu.memory_space<vmem>>) attributes {dimension_semantics = [#tpu.dimension_semantics<parallel>], iteration_bounds = array<i64: 1>, scalar_prefetch = 0 : i64, scratch_operands = 0 : i64, tpu.core_type = #tpu.core_type<tc>, window_params = [{transform_indices = @transform_0, window_bounds = array<i64: 6, 256>}, {transform_indices = @transform_1, window_bounds = array<i64: 6, 256>}]} {
    %c0 = arith.constant 0 : index
    %c0_0 = arith.constant 0 : index
    %0 = vector.load %arg1[%c0, %c0_0] : memref<6x256xf32, #tpu.memory_space<vmem>>, vector<6x256xf32>
    %1 = tpu.iota {dimensions = array<i32: 1>} : vector<6x256xi32>
    %c16_i32 = arith.constant 16 : i32
    %c0_i32 = arith.constant 0 : i32
    %2 = arith.cmpi eq, %c16_i32, %c0_i32 : i32
    %c1_i32 = arith.constant 1 : i32
    %3 = arith.select %2, %c1_i32, %c16_i32 : i32
    %4 = vector.broadcast %3 : i32 to vector<6x256xi32>
    %5 = arith.remsi %1, %4 : vector<6x256xi32>
    %c0_i32_1 = arith.constant 0 : i32
    %6 = vector.broadcast %c0_i32_1 : i32 to vector<6x256xi32>
    %7 = arith.cmpi ne, %5, %6 : vector<6x256xi32>
    %c0_i32_2 = arith.constant 0 : i32
    %8 = vector.broadcast %c0_i32_2 : i32 to vector<6x256xi32>
    %9 = arith.cmpi slt, %5, %8 : vector<6x256xi32>
    %c0_i32_3 = arith.constant 0 : i32
    %10 = arith.cmpi slt, %3, %c0_i32_3 : i32
    %11 = vector.broadcast %10 : i1 to vector<6x256xi1>
    %12 = vector.broadcast %11 : vector<6x256xi1> to vector<6x256xi1>
    %13 = arith.xori %9, %12 : vector<6x256xi1>
    %14 = arith.andi %13, %7 : vector<6x256xi1>
    %15 = vector.broadcast %3 : i32 to vector<6x256xi32>
    %16 = arith.addi %5, %15 : vector<6x256xi32>
    %17 = arith.select %14, %16, %5 : vector<6x256xi1>, vector<6x256xi32>
    %c1_i32_4 = arith.constant 1 : i32
    %18 = tpu.dynamic_rotate %0 by %c1_i32_4 dim 1 : vector<6x256xf32>, i32 -> vector<6x256xf32>
    %c-1_i32 = arith.constant -1 : i32
    %19 = vector.broadcast %c-1_i32 : i32 to vector<6x256xi32>
    %20 = arith.addi %17, %19 : vector<6x256xi32>
    %c0_i32_5 = arith.constant 0 : i32
    %21 = vector.broadcast %c0_i32_5 : i32 to vector<6x256xi32>
    %22 = arith.cmpi sge, %20, %21 : vector<6x256xi32>
    %c-1_i32_6 = arith.constant -1 : i32
    %23 = vector.broadcast %c-1_i32_6 : i32 to vector<6x256xi32>
    %24 = arith.addi %17, %23 : vector<6x256xi32>
    %c16_i32_7 = arith.constant 16 : i32
    %25 = vector.broadcast %c16_i32_7 : i32 to vector<6x256xi32>
    %26 = arith.cmpi slt, %24, %25 : vector<6x256xi32>
    %27 = arith.andi %22, %26 : vector<6x256xi1>
    %cst = arith.constant 0.000000e+00 : f32
    %28 = vector.broadcast %cst : f32 to vector<6x256xf32>
    %29 = arith.select %27, %18, %28 : vector<6x256xi1>, vector<6x256xf32>
    %cst_8 = arith.constant 0.296109587 : f32
    %30 = vector.broadcast %cst_8 : f32 to vector<6x256xf32>
    %31 = arith.mulf %30, %29 : vector<6x256xf32>
    %cst_9 = arith.constant 0.407780766 : f32
    %32 = vector.broadcast %cst_9 : f32 to vector<6x256xf32>
    %33 = arith.mulf %32, %0 : vector<6x256xf32>
    %34 = arith.addf %31, %33 : vector<6x256xf32>
    %c255_i32 = arith.constant 255 : i32
    %35 = tpu.dynamic_rotate %0 by %c255_i32 dim 1 : vector<6x256xf32>, i32 -> vector<6x256xf32>
    %c1_i32_10 = arith.constant 1 : i32
    %36 = vector.broadcast %c1_i32_10 : i32 to vector<6x256xi32>
    %37 = arith.addi %17, %36 : vector<6x256xi32>
    %c0_i32_11 = arith.constant 0 : i32
    %38 = vector.broadcast %c0_i32_11 : i32 to vector<6x256xi32>
    %39 = arith.cmpi sge, %37, %38 : vector<6x256xi32>
    %c1_i32_12 = arith.constant 1 : i32
    %40 = vector.broadcast %c1_i32_12 : i32 to vector<6x256xi32>
    %41 = arith.addi %17, %40 : vector<6x256xi32>
    %c16_i32_13 = arith.constant 16 : i32
    %42 = vector.broadcast %c16_i32_13 : i32 to vector<6x256xi32>
    %43 = arith.cmpi slt, %41, %42 : vector<6x256xi32>
    %44 = arith.andi %39, %43 : vector<6x256xi1>
    %cst_14 = arith.constant 0.000000e+00 : f32
    %45 = vector.broadcast %cst_14 : f32 to vector<6x256xf32>
    %46 = arith.select %44, %35, %45 : vector<6x256xi1>, vector<6x256xf32>
    %cst_15 = arith.constant 0.296109587 : f32
    %47 = vector.broadcast %cst_15 : f32 to vector<6x256xf32>
    %48 = arith.mulf %47, %46 : vector<6x256xf32>
    %49 = arith.addf %34, %48 : vector<6x256xf32>
    %c16_i32_16 = arith.constant 16 : i32
    %50 = tpu.dynamic_rotate %49 by %c16_i32_16 dim 1 : vector<6x256xf32>, i32 -> vector<6x256xf32>
    %c-16_i32 = arith.constant -16 : i32
    %51 = vector.broadcast %c-16_i32 : i32 to vector<6x256xi32>
    %52 = arith.addi %1, %51 : vector<6x256xi32>
    %c0_i32_17 = arith.constant 0 : i32
    %53 = vector.broadcast %c0_i32_17 : i32 to vector<6x256xi32>
    %54 = arith.cmpi sge, %52, %53 : vector<6x256xi32>
    %c-16_i32_18 = arith.constant -16 : i32
    %55 = vector.broadcast %c-16_i32_18 : i32 to vector<6x256xi32>
    %56 = arith.addi %1, %55 : vector<6x256xi32>
    %c256_i32 = arith.constant 256 : i32
    %57 = vector.broadcast %c256_i32 : i32 to vector<6x256xi32>
    %58 = arith.cmpi slt, %56, %57 : vector<6x256xi32>
    %59 = arith.andi %54, %58 : vector<6x256xi1>
    %cst_19 = arith.constant 0.000000e+00 : f32
    %60 = vector.broadcast %cst_19 : f32 to vector<6x256xf32>
    %61 = arith.select %59, %50, %60 : vector<6x256xi1>, vector<6x256xf32>
    %cst_20 = arith.constant 0.296109587 : f32
    %62 = vector.broadcast %cst_20 : f32 to vector<6x256xf32>
    %63 = arith.mulf %62, %61 : vector<6x256xf32>
    %cst_21 = arith.constant 0.407780766 : f32
    %64 = vector.broadcast %cst_21 : f32 to vector<6x256xf32>
    %65 = arith.mulf %64, %49 : vector<6x256xf32>
    %66 = arith.addf %63, %65 : vector<6x256xf32>
    %c240_i32 = arith.constant 240 : i32
    %67 = tpu.dynamic_rotate %49 by %c240_i32 dim 1 : vector<6x256xf32>, i32 -> vector<6x256xf32>
    %c16_i32_22 = arith.constant 16 : i32
    %68 = vector.broadcast %c16_i32_22 : i32 to vector<6x256xi32>
    %69 = arith.addi %1, %68 : vector<6x256xi32>
    %c0_i32_23 = arith.constant 0 : i32
    %70 = vector.broadcast %c0_i32_23 : i32 to vector<6x256xi32>
    %71 = arith.cmpi sge, %69, %70 : vector<6x256xi32>
    %c16_i32_24 = arith.constant 16 : i32
    %72 = vector.broadcast %c16_i32_24 : i32 to vector<6x256xi32>
    %73 = arith.addi %1, %72 : vector<6x256xi32>
    %c256_i32_25 = arith.constant 256 : i32
    %74 = vector.broadcast %c256_i32_25 : i32 to vector<6x256xi32>
    %75 = arith.cmpi slt, %73, %74 : vector<6x256xi32>
    %76 = arith.andi %71, %75 : vector<6x256xi1>
    %cst_26 = arith.constant 0.000000e+00 : f32
    %77 = vector.broadcast %cst_26 : f32 to vector<6x256xf32>
    %78 = arith.select %76, %67, %77 : vector<6x256xi1>, vector<6x256xf32>
    %cst_27 = arith.constant 0.296109587 : f32
    %79 = vector.broadcast %cst_27 : f32 to vector<6x256xf32>
    %80 = arith.mulf %79, %78 : vector<6x256xf32>
    %81 = arith.addf %66, %80 : vector<6x256xf32>
    %c0_28 = arith.constant 0 : index
    %c0_29 = arith.constant 0 : index
    %82 = vector.load %arg2[%c0_28, %c0_29] : memref<6x256xf32, #tpu.memory_space<vmem>>, vector<6x256xf32>
    tpu.vector_store %arg2[%c0_28, %c0_29], %81 {strides = array<i32>} : memref<6x256xf32, #tpu.memory_space<vmem>>, vector<6x256xf32>,
    return
  }
  func.func @transform_0(%arg0: i32) -> (i32, i32) {
    %c0_i32 = arith.constant 0 : i32
    %c0_i32_0 = arith.constant 0 : i32
    return %arg0, %c0_i32 : i32, i32
  }
  func.func @transform_1(%arg0: i32) -> (i32, i32) {
    %c0_i32 = arith.constant 0 : i32
    %c0_i32_0 = arith.constant 0 : i32
    return %arg0, %c0_i32 : i32, i32
  }
}

</mosaic_0001>

<bundles_post_ra>
// kernel: tpu_custom_call.1
= control target key start
LH: loop header
LB: loop body
LE: loop exit
PB: predicated region body
PF: predicated region fallthrough
CT: control target
= control target key end

     0   :  { %6 = vsyncpa [#allocation3], 0  ;;  %s258_s0 = inlined_call_operand.hbm [shape: f32[6,256], index: 0, kind: input, shape index: {}]   ;;  %s259_s1 = inlined_call_operand.hbm [shape: f32[6,256], index: 1, kind: output, shape index: {}]  }
   0x1   :  { %7 = vsyncpa [#allocation4], 0  ;;  %s209_s6 = smov [#allocation2]   ;;  %s161_s10 = scalar_lea.hbm %s258_s0, 256 }
   0x2   :  { %s14_s7 = sshll.u32 %s209_s6, 4  ;;  %p162_p0 = scmp.ne.s32.totalorder %s258_s0, %s161_s10  ;;  %s15_s7 = int_to_ptr.vmem [resolvable:$true] %s14_s7 }
   0x3   :  { %p165_p1 = scmp.lt.u32.totalorder %s161_s10, %s258_s0 }
   0x5   :  { %p167_p2 = pnand %p165_p1, %p162_p0 }
   0x7   :  { %170 = shalt.err (!%p167_p2)
}
   0x8   :  { %s171_s15 = scalar_lea.vmem %s15_s7, 256  ;;  %p176_p4 = scmp.lt.s32.totalorder %s15_s7, %s15_s7 }
   0x9   :  { %p172_p3 = scmp.ne.s32.totalorder %s15_s7, %s171_s15  ;;  %p177_p5 = scmp.lt.s32.totalorder %s171_s15, %s171_s15 }
   0xb   :  { %p178_p6 = por %p177_p5, %p176_p4 }
   0xd   :  { %p179_p7 = pnand %p178_p6, %p172_p3 }
   0xf   :  { %182 = shalt.err (!%p179_p7)
}
  0x10   :  { %17 = dma.hbm_to_vmem [thread:$0]  %s258_s0, 256, %s15_s7, [#allocation3]  }
  0x11   :  { %205 = dma.done.wait [#allocation3], 256  }
  0x12   :  { %206 = vsyncadd [#allocation3], 4294967040  ;;  %v21_v0 = vld [vmem:[#allocation2] sm:$0x3f]  ;;  %s210_s18 = smov 127   ;;  %s211_s19 = smov 1   ;;  %v23_v2 = vlaneseq }
  0x13   :  { %73 = vrot.lane.b32.xlu1 %v21_v0, %s210_s18  ;;  %50 = vrot.lane.b32.xlu0 %v21_v0, %s211_s19  ;;  %v22_v1 = vld [vmem:[#allocation2 + $0x8] sm:$0x3f]  ;;  %v69_v13 = vmul.f32 0.40778077, %v21_v0  ;;  %s212_s0 = smov 16   ;;  %s213_s20 = smov 112  }
  0x14   :  { %v237_v3 = vand.u32 127, %v23_v2  ;;  %v70_v20 = vmul.f32 0.40778077, %v22_v1  ;;  %s214_s21 = smov [#allocation5]  }
  0x15   :  { %s146_s22 = sshll.u32 %s214_s21, 4  ;;  %s147_s22 = int_to_ptr.vmem [resolvable:$true] %s146_s22 }
  0x16   :  { %v25_v4 = vadd.s32 128, %v237_v3  ;;  %v30_v5 = vand.u32 15, %v237_v3  ;;  %vm77_vm0 = vcmp.lt.s32.totalorder %v237_v3, 127  ;;  %vm54_vm1 = vcmp.lt.s32.totalorder %v237_v3, 1  ;;  %s183_s23 = scalar_lea.vmem %s147_s22, 256  ;;  %p188_p9 = scmp.lt.s32.totalorder %s147_s22, %s147_s22 }
  0x17   :  { %75 = vrot.lane.b32.xlu1 %v22_v1, %s210_s18  ;;  %52 = vrot.lane.b32.xlu0 %v22_v1, %s211_s19  ;;  %v101_v33 = vadd.s32 4294967280, %v237_v3  ;;  %vm98_vm6 = vcmp.lt.s32.totalorder %v237_v3, 16  ;;  %vm121_vm8 = vcmp.lt.s32.totalorder %v237_v3, 112  ;;  %p184_p8 = scmp.ne.s32.totalorder %s147_s22, %s183_s23  ;;  %p189_p10 = scmp.lt.s32.totalorder %s183_s23, %s183_s23 }
  0x18   :  { %v37_v6 = vand.u32 15, %v25_v4  ;;  %v80_v7 = vadd.s32 1, %v30_v5  ;;  %v57_v8 = vadd.s32 4294967295, %v30_v5  ;;  %v125_v34 = vadd.s32 16, %v25_v4 }
  0x19   :  { %vm103_vm7 = vcmp.ge.s32.totalorder %v101_v33, 0  ;;  %p190_p11 = por %p189_p10, %p188_p9 }
  0x1a   :  { %v58_v9 = vadd.s32 4294967295, %v37_v6  ;;  %v81_v12 = vadd.s32 1, %v37_v6  ;;  %vm84_vm2 = vcmp.lt.s32.totalorder %v80_v7, 16  ;;  %vm59_vm3 = vcmp.ge.s32.totalorder %v57_v8, 0 }
  0x1b   :  { %vm129_vm9 = vcmp.lt.s32.totalorder %v125_v34, 256  ;;  %p191_p12 = pnand %p190_p11, %p184_p8 }
  0x1c   :  { %vm60_vm4 = vcmp.ge.s32.totalorder %v58_v9, 0  ;;  %vm85_vm5 = vcmp.lt.s32.totalorder %v81_v12, 16 }
  0x85   :  { %v74_v10 = vpop.permute.xlu1 %73  ;;  %v51_v11 = vpop.permute.xlu0 %50 }
  0x89   :  { %v76_v14 = vpop.permute.xlu1 %75  ;;  %v53_v15 = vpop.permute.xlu0 %52 }
  0x8a   :  { %v78_v16 = vsel %vm77_vm0, %v74_v10, %v76_v14  ;;  %v79_v17 = vsel %vm77_vm0, %v76_v14, %v74_v10  ;;  %v55_v18 = vsel %vm54_vm1, %v51_v11, %v53_v15  ;;  %v56_v19 = vsel %vm54_vm1, %v53_v15, %v51_v11 }
  0x8b   :  { %v88_v21 = vsel %vm84_vm2, %v78_v16, 0.0  ;;  %v65_v22 = vsel %vm59_vm3, %v56_v19, 0.0  ;;  %v66_v23 = vsel %vm60_vm4, %v55_v18, 0.0  ;;  %v89_v24 = vsel %vm85_vm5, %v79_v17, 0.0 }
  0x8c   :  { %v67_v25 = vmul.f32 0.2961096, %v65_v22  ;;  %v68_v26 = vmul.f32 0.2961096, %v66_v23  ;;  %v90_v27 = vmul.f32 0.2961096, %v88_v21 }
  0x8d   :  { %v91_v29 = vmul.f32 0.2961096, %v89_v24 }
  0x8e   :  { %v71_v28 = vadd.f32 %v69_v13, %v67_v25  ;;  %v72_v30 = vadd.f32 %v70_v20, %v68_v26 }
  0x90   :  { %v92_v31 = vadd.f32 %v90_v27, %v71_v28  ;;  %v93_v32 = vadd.f32 %v91_v29, %v72_v30 }
  0x92   :  { %94 = vrot.lane.b32.xlu0 %v92_v31, %s212_s0  ;;  %96 = vrot.lane.b32.xlu1 %v93_v32, %s212_s0  ;;  %v113_v42 = vmul.f32 0.40778077, %v92_v31  ;;  %v114_v45 = vmul.f32 0.40778077, %v93_v32 }
  0x96   :  { %117 = vrot.lane.b32.xlu0 %v92_v31, %s213_s20  ;;  %119 = vrot.lane.b32.xlu1 %v93_v32, %s213_s20 }
 0x104   :  { %v95_v35 = vpop.permute.xlu0 %94  ;;  %v97_v36 = vpop.permute.xlu1 %96 }
 0x105   :  { %v99_v37 = vsel %vm98_vm6, %v95_v35, %v97_v36  ;;  %v100_v38 = vsel %vm98_vm6, %v97_v36, %v95_v35 }
 0x106   :  { %v109_v39 = vsel %vm103_vm7, %v100_v38, 0.0  ;;  %v112_v41 = vmul.f32 0.2961096, %v99_v37 }
 0x107   :  { %v111_v40 = vmul.f32 0.2961096, %v109_v39 }
 0x108   :  { %v118_v43 = vpop.permute.xlu0 %117  ;;  %v120_v44 = vpop.permute.xlu1 %119  ;;  %v116_v51 = vadd.f32 %v114_v45, %v112_v41 }
 0x109   :  { %v115_v46 = vadd.f32 %v113_v42, %v111_v40  ;;  %v122_v47 = vsel %vm121_vm8, %v118_v43, %v120_v44  ;;  %v123_v48 = vsel %vm121_vm8, %v120_v44, %v118_v43 }
 0x10a   :  { %v133_v49 = vsel %vm129_vm9, %v123_v48, 0.0  ;;  %v134_v50 = vmul.f32 0.2961096, %v122_v47 }
 0x10b   :  { %v135_v52 = vmul.f32 0.2961096, %v133_v49 }
 0x10c   :  { %v136_v53 = vadd.f32 %v134_v50, %v115_v46 }
 0x10d   :  { %v137_v54 = vadd.f32 %v135_v52, %v116_v51 }
 0x10e   :  { %138 = vst [vmem:[#allocation5] sm:$0x3f] %v136_v53 }
 0x10f   :  { %139 = vst [vmem:[#allocation5 + $0x8] sm:$0x3f] %v137_v54 }
 0x110   :  { %194 = shalt.err (!%p191_p12)
}
 0x111   :  { %s195_s26 = scalar_lea.hbm %s259_s1, 256 }
 0x112   :  { %p196_p13 = scmp.ne.s32.totalorder %s259_s1, %s195_s26  ;;  %p199_p0 = scmp.lt.u32.totalorder %s195_s26, %s259_s1 }
 0x114   :  { %p201_p1 = pnand %p199_p0, %p196_p13 }
 0x116   :  { %204 = shalt.err (!%p201_p1)
}
 0x117   :  { %149 = dma.vmem_to_hbm [thread:$0]  %s147_s22, 256, %s259_s1, [#allocation4]  }
 0x118   :  { %207 = dma.done.wait [#allocation4], 256  }
 0x119   :  { %208 = vsyncadd [#allocation4], 4294967040 }
 0x11a   :  { %153 = vsyncpa [#allocation3], 1 }
 0x11b   :  { %154 = vsyncpa [#allocation4], 1 }

</bundles_post_ra>
